<compile_context>
chip_gen: v5e
topology: v5e:2x2
jax: 0.10.0
libtpu: 0.0.40
codegen_flags: <defaults>
</compile_context>

<pallas_src>
import functools

import jax
import jax.numpy as jnp
from jax import lax
from jax.experimental import pallas as pl
from jax.experimental.pallas import tpu as pltpu


def _content_contrastive_kernel(c_ref, s_ref, sn2_ref, out_ref, *,
                                m_total, n, tile_m, inv_temp, inv_nb):
    i = pl.program_id(0)

    c = c_ref[...]                                   # (TILE_M, D), input dtype (f32 / bf16)
    s = s_ref[...]                                   # (B, D)      resident style
    d = c.shape[1]

    # ---- cosine-similarity numerators, lane-dense (B, TILE_M) ------------------------------
    mm_dtype = jnp.promote_types(c.dtype, s.dtype)
    mm_prec = (lax.Precision.HIGHEST if mm_dtype == jnp.float32
               else lax.Precision.DEFAULT)
    dots = lax.dot_general(
        s.astype(mm_dtype), c.astype(mm_dtype),
        dimension_numbers=(((1,), (1,)), ((), ())),
        preferred_element_type=jnp.float32,
        precision=mm_prec)                           # (B, TILE_M)

    # ---- content-row squared norms, produced lane-major by a ones-row matmul on the MXU ----
    csq = jnp.square(c.astype(jnp.float32))          # f32 square keeps norm precision for bf16
    ones_row = jnp.ones((1, d), jnp.float32)
    cn2_t = lax.dot_general(
        ones_row, csq, dimension_numbers=(((1,), (1,)), ((), ())),
        preferred_element_type=jnp.float32,
        precision=lax.Precision.HIGHEST)             # (1, TILE_M)

    sn2 = sn2_ref[...].astype(jnp.float32)           # (B, 1) precomputed style squared norms

    # 1/max(||s||*||c||, 1e-8) == min(rsqrt(||s||^2*||c||^2), 1e8): one EUP rsqrt, no divide.
    inv = jnp.minimum(lax.rsqrt(sn2 * cn2_t), 1e8) * inv_temp
    logits = dots * inv                              # (B, TILE_M)

    # ---- cross entropy with labels label[j] = j // n ----------------------------------------
    col = lax.broadcasted_iota(jnp.int32, logits.shape, 1) + i * tile_m   # global content row
    row = lax.broadcasted_iota(jnp.int32, logits.shape, 0)                # class index
    lo = row * n                                                          # avoid vector int div
    onehot = (col >= lo) & (col < lo + n)

    mmax = jnp.max(logits, axis=0, keepdims=True)                         # sublane reductions
    lse = mmax + jnp.log(jnp.sum(jnp.exp(logits - mmax), axis=0, keepdims=True))
    picked = jnp.sum(jnp.where(onehot, logits, 0.0), axis=0, keepdims=True)

    # mask tail columns of a partial last tile (their block data is uninitialized)
    valid = (lax.broadcasted_iota(jnp.int32, (1, tile_m), 1) + i * tile_m) < m_total
    loss_cols = jnp.where(valid, lse - picked, 0.0)                       # (1, TILE_M)
    partial = jnp.sum(loss_cols, axis=1, keepdims=True) * inv_nb          # (1, 1)

    # Per-tile partial loss, written into this tile's own (8,128) output block: no cross-step
    # accumulator -> the M axis can be "parallel" and both v7x TensorCores stream content.
    out_ref[...] = jnp.broadcast_to(partial, out_ref.shape)


def _pick_tile_m(m, d, b, itemsize, vmem_budget=16 * 1024 * 1024):
    # Live VMEM per grid step ~ double-buffered content block + f32 upcast/square temp
    # + a handful of (B, TILE_M) f32/i32 temps.  Budgeted for v7x's 64 MiB physical VMEM.
    per_row = d * (2 * itemsize + 8) + 16 * b + 64
    t = min(4096, max(8, vmem_budget // per_row))
    t = (t // 512) * 512 if t >= 512 else (t // 8) * 8
    return m if m <= t else t


def content_contrastive_loss(content, style, b, n, temperature, *, tile_m=None):
    """Pallas implementation of Content_Contrastive.forward(content, style, b, n)."""
    M, D = content.shape
    B, D2 = style.shape
    assert M == b * n, f"content rows {M} != b*n = {b * n}"
    assert B == b, f"style rows {B} != b = {b}"
    assert D == D2

    if tile_m is None:
        TILE_M = _pick_tile_m(M, D, B, jnp.dtype(content.dtype).itemsize)
    else:
        TILE_M = M if M <= tile_m else max(8, (tile_m // 8) * 8)
    assert TILE_M == M or (TILE_M > 0 and TILE_M % 8 == 0)
    num_tiles = pl.cdiv(M, TILE_M)

    # Style-side hoist: squared row norms computed once here (tiny), resident in VMEM.
    s32 = style.astype(jnp.float32)
    sn2 = jnp.sum(s32 * s32, axis=-1, keepdims=True)          # (B, 1)

    kernel = functools.partial(
        _content_contrastive_kernel,
        m_total=M, n=n, tile_m=TILE_M,
        inv_temp=1.0 / float(temperature), inv_nb=1.0 / float(n * b))

    c_bytes = M * D * jnp.dtype(content.dtype).itemsize
    s_bytes = B * D * jnp.dtype(style.dtype).itemsize
    cost = pl.CostEstimate(
        flops=int(2 * M * B * D + 3 * M * D + 14 * M * B),
        transcendentals=int(2 * M * B + M),
        bytes_accessed=int(c_bytes + s_bytes + B * 4 + num_tiles * 8 * 128 * 4))

    out = pl.pallas_call(
        kernel,
        out_shape=jax.ShapeDtypeStruct((num_tiles * 8, 128), jnp.float32),
        grid=(num_tiles,),
        in_specs=[
            pl.BlockSpec((TILE_M, D), lambda i: (i, 0)),   # content: streamed, double-buffered
            pl.BlockSpec((B, D), lambda i: (0, 0)),        # style: resident
            pl.BlockSpec((B, 1), lambda i: (0, 0)),        # style squared norms: resident
        ],
        out_specs=pl.BlockSpec((8, 128), lambda i: (i, 0)),  # per-tile partial-loss block
        compiler_params=pltpu.CompilerParams(
            dimension_semantics=("parallel",),
            vmem_limit_bytes=48 * 1024 * 1024),
        cost_estimate=cost,
    )(content, style, sn2)

    partials = out.reshape(num_tiles, 8, 128)[:, 0, 0]       # one scalar per tile
    return jnp.sum(partials)


def _reference_loss(content, style, b, n, temperature):
    """Plain-JAX reference mirroring the PyTorch forward, for verification."""
    c = content.astype(jnp.float32)
    s = style.astype(jnp.float32)
    num = jnp.matmul(c, s.T, precision=lax.Precision.HIGHEST)
    cn = jnp.linalg.norm(c, axis=-1, keepdims=True)
    sn = jnp.linalg.norm(s, axis=-1, keepdims=True)
    logits = num / jnp.maximum(cn * sn.T, 1e-8) / temperature
    lse = jax.nn.logsumexp(logits, axis=-1)
    labels = jnp.repeat(jnp.arange(b), n)
    picked = logits[jnp.arange(b * n), labels]
    return jnp.sum(lse - picked) / (n * b)


if __name__ == "__main__":
    # Small single-tile f32 config (module's (b*n, D) content / (b, D) style inputs).
    b, n, D = 2, 8, 32
    temperature = 0.5
    key = jax.random.PRNGKey(0)
    k1, k2, k3, k4 = jax.random.split(key, 4)
    content = jax.random.normal(k1, (b * n, D), dtype=jnp.float32)
    style = jax.random.normal(k2, (b, D), dtype=jnp.float32)

    loss = content_contrastive_loss(content, style, b, n, temperature)
    jax.block_until_ready(loss)
    ref = _reference_loss(content, style, b, n, temperature)
    assert jnp.allclose(loss, ref, rtol=1e-4, atol=1e-4), (loss, ref)

    # Multi-tile bf16 config: exercises the M grid (tile_m=512 -> 2 tiles, the second partially
    # masked), the per-tile partial outputs on the "parallel" axis and the bf16 content stream.
    b2, n2, D2 = 4, 160, 128
    t2 = 0.1
    content2 = jax.random.normal(k3, (b2 * n2, D2), dtype=jnp.float32).astype(jnp.bfloat16)
    style2 = jax.random.normal(k4, (b2, D2), dtype=jnp.float32).astype(jnp.bfloat16)

    loss2 = content_contrastive_loss(content2, style2, b2, n2, t2, tile_m=512)
    jax.block_until_ready(loss2)
    ref2 = _reference_loss(content2.astype(jnp.float32), style2.astype(jnp.float32), b2, n2, t2)
    assert jnp.allclose(loss2, ref2, rtol=1e-3, atol=1e-3), (loss2, ref2)

    print("KERNEL_OK")
</pallas_src>

<mosaic_0001>
module attributes {stable_mosaic.version = 11 : i64} {
  func.func @_content_contrastive_kernel(%arg0: i32, %arg1: memref<16x32xf32, #tpu.memory_space<vmem>>, %arg2: memref<2x32xf32, #tpu.memory_space<vmem>>, %arg3: memref<2x1xf32, #tpu.memory_space<vmem>>, %arg4: memref<8x128xf32, #tpu.memory_space<vmem>>) attributes {dimension_semantics = [#tpu.dimension_semantics<parallel>], iteration_bounds = array<i64: 1>, scalar_prefetch = 0 : i64, scratch_operands = 0 : i64, tpu.core_type = #tpu.core_type<tc>, window_params = [{transform_indices = @transform_0, window_bounds = array<i64: 16, 32>}, {pipeline_mode = #tpu.pipeline_mode<synchronous>, transform_indices = @transform_1, window_bounds = array<i64: 2, 32>}, {pipeline_mode = #tpu.pipeline_mode<synchronous>, transform_indices = @transform_2, window_bounds = array<i64: 2, 1>}, {transform_indices = @transform_3, window_bounds = array<i64: 8, 128>}]} {
    %c0 = arith.constant 0 : index
    %c0_0 = arith.constant 0 : index
    %0 = vector.load %arg1[%c0, %c0_0] : memref<16x32xf32, #tpu.memory_space<vmem>>, vector<16x32xf32>
    %c0_1 = arith.constant 0 : index
    %c0_2 = arith.constant 0 : index
    %1 = vector.load %arg2[%c0_1, %c0_2] : memref<2x32xf32, #tpu.memory_space<vmem>>, vector<2x32xf32>
    %cst = arith.constant dense<0.000000e+00> : vector<2x16xf32>
    %2 = tpu.matmul %1, %0, %cst {dimension_numbers = #tpu.dot_dimension_numbers<[1], [1], [0], [0], [0, 0, 1, 0], [], []>, precision = #tpu.contract_precision<fp32>} : vector<2x32xf32>, vector<16x32xf32>, vector<2x16xf32> -> vector<2x16xf32>
    %3 = arith.mulf %0, %0 : vector<16x32xf32>
    %cst_3 = arith.constant 1.000000e+00 : f32
    %4 = vector.broadcast %cst_3 : f32 to vector<1x32xf32>
    %cst_4 = arith.constant dense<0.000000e+00> : vector<1x16xf32>
    %5 = tpu.matmul %4, %3, %cst_4 {dimension_numbers = #tpu.dot_dimension_numbers<[1], [1], [0], [0], [0, 0, 1, 0], [], []>, precision = #tpu.contract_precision<fp32>} : vector<1x32xf32>, vector<16x32xf32>, vector<1x16xf32> -> vector<1x16xf32>
    %c0_5 = arith.constant 0 : index
    %c0_6 = arith.constant 0 : index
    %6 = vector.load %arg3[%c0_5, %c0_6] : memref<2x1xf32, #tpu.memory_space<vmem>>, vector<2x1xf32>
    %7 = vector.broadcast %6 : vector<2x1xf32> to vector<2x16xf32>
    %8 = vector.broadcast %5 : vector<1x16xf32> to vector<2x16xf32>
    %9 = arith.mulf %7, %8 : vector<2x16xf32>
    %10 = math.rsqrt %9 : vector<2x16xf32>
    %cst_7 = arith.constant 1.000000e+08 : f32
    %11 = vector.broadcast %cst_7 : f32 to vector<2x16xf32>
    %12 = arith.minimumf %10, %11 : vector<2x16xf32>
    %cst_8 = arith.constant 2.000000e+00 : f32
    %13 = vector.broadcast %cst_8 : f32 to vector<2x16xf32>
    %14 = arith.mulf %12, %13 : vector<2x16xf32>
    %15 = arith.mulf %2, %14 : vector<2x16xf32>
    %16 = tpu.iota {dimensions = array<i32: 1>} : vector<2x16xi32>
    %c16_i32 = arith.constant 16 : i32
    %17 = arith.muli %arg0, %c16_i32 : i32
    %18 = vector.broadcast %17 : i32 to vector<2x16xi32>
    %19 = arith.addi %16, %18 : vector<2x16xi32>
    %20 = tpu.iota {dimensions = array<i32: 0>} : vector<2x16xi32>
    %c8_i32 = arith.constant 8 : i32
    %21 = vector.broadcast %c8_i32 : i32 to vector<2x16xi32>
    %22 = arith.muli %20, %21 : vector<2x16xi32>
    %23 = arith.cmpi sge, %19, %22 : vector<2x16xi32>
    %c8_i32_9 = arith.constant 8 : i32
    %24 = vector.broadcast %c8_i32_9 : i32 to vector<2x16xi32>
    %25 = arith.addi %22, %24 : vector<2x16xi32>
    %26 = arith.cmpi slt, %19, %25 : vector<2x16xi32>
    %27 = arith.andi %23, %26 : vector<2x16xi1>
    %cst_10 = arith.constant dense<0xFF800000> : vector<16xf32>
    %28 = vector.multi_reduction <maximumf>, %15, %cst_10 [0] : vector<2x16xf32> to vector<16xf32>
    %29 = vector.shape_cast %28 : vector<16xf32> to vector<1x16xf32>
    %30 = vector.broadcast %29 : vector<1x16xf32> to vector<2x16xf32>
    %31 = arith.subf %15, %30 : vector<2x16xf32>
    %32 = math.exp %31 : vector<2x16xf32>
    %cst_11 = arith.constant dense<0.000000e+00> : vector<16xf32>
    %33 = vector.multi_reduction <add>, %32, %cst_11 [0] : vector<2x16xf32> to vector<16xf32>
    %34 = vector.shape_cast %33 : vector<16xf32> to vector<1x16xf32>
    %35 = math.log %34 : vector<1x16xf32>
    %36 = arith.addf %29, %35 : vector<1x16xf32>
    %cst_12 = arith.constant 0.000000e+00 : f32
    %37 = vector.broadcast %cst_12 : f32 to vector<2x16xf32>
    %38 = arith.select %27, %15, %37 : vector<2x16xi1>, vector<2x16xf32>
    %cst_13 = arith.constant dense<0.000000e+00> : vector<16xf32>
    %39 = vector.multi_reduction <add>, %38, %cst_13 [0] : vector<2x16xf32> to vector<16xf32>
    %40 = vector.shape_cast %39 : vector<16xf32> to vector<1x16xf32>
    %41 = tpu.iota {dimensions = array<i32: 1>} : vector<1x16xi32>
    %c16_i32_14 = arith.constant 16 : i32
    %42 = arith.muli %arg0, %c16_i32_14 : i32
    %43 = vector.broadcast %42 : i32 to vector<1x16xi32>
    %44 = arith.addi %41, %43 : vector<1x16xi32>
    %c16_i32_15 = arith.constant 16 : i32
    %45 = vector.broadcast %c16_i32_15 : i32 to vector<1x16xi32>
    %46 = arith.cmpi slt, %44, %45 : vector<1x16xi32>
    %47 = arith.subf %36, %40 : vector<1x16xf32>
    %cst_16 = arith.constant 0.000000e+00 : f32
    %48 = vector.broadcast %cst_16 : f32 to vector<1x16xf32>
    %49 = arith.select %46, %47, %48 : vector<1x16xi1>, vector<1x16xf32>
    %cst_17 = arith.constant dense<0.000000e+00> : vector<1xf32>
    %50 = vector.multi_reduction <add>, %49, %cst_17 [1] : vector<1x16xf32> to vector<1xf32>
    %51 = vector.shape_cast %50 : vector<1xf32> to vector<1x1xf32>
    %cst_18 = arith.constant 6.250000e-02 : f32
    %52 = vector.broadcast %cst_18 : f32 to vector<1x1xf32>
    %53 = arith.mulf %51, %52 : vector<1x1xf32>
    %54 = vector.shape_cast %53 : vector<1x1xf32> to vector<1x1xf32>
    %55 = vector.broadcast %54 : vector<1x1xf32> to vector<8x128xf32>
    %c0_19 = arith.constant 0 : index
    %c0_20 = arith.constant 0 : index
    %56 = vector.load %arg4[%c0_19, %c0_20] : memref<8x128xf32, #tpu.memory_space<vmem>>, vector<8x128xf32>
    tpu.vector_store %arg4[%c0_19, %c0_20], %55 {strides = array<i32>} : memref<8x128xf32, #tpu.memory_space<vmem>>, vector<8x128xf32>,
    return
  }
  func.func @transform_0(%arg0: i32) -> (i32, i32) {
    %c0_i32 = arith.constant 0 : i32
    %c0_i32_0 = arith.constant 0 : i32
    return %arg0, %c0_i32 : i32, i32
  }
  func.func @transform_1(%arg0: i32) -> (i32, i32) {
    %c0_i32 = arith.constant 0 : i32
    %c0_i32_0 = arith.constant 0 : i32
    %c0_i32_1 = arith.constant 0 : i32
    return %c0_i32, %c0_i32_0 : i32, i32
  }
  func.func @transform_2(%arg0: i32) -> (i32, i32) {
    %c0_i32 = arith.constant 0 : i32
    %c0_i32_0 = arith.constant 0 : i32
    %c0_i32_1 = arith.constant 0 : i32
    return %c0_i32, %c0_i32_0 : i32, i32
  }
  func.func @transform_3(%arg0: i32) -> (i32, i32) {
    %c0_i32 = arith.constant 0 : i32
    %c0_i32_0 = arith.constant 0 : i32
    return %arg0, %c0_i32 : i32, i32
  }
}

</mosaic_0001>

<bundles_post_ra>
// kernel: tpu_custom_call.1
= control target key start
LH: loop header
LB: loop body
LE: loop exit
PB: predicated region body
PF: predicated region fallthrough
CT: control target
= control target key end

     0   :  { %8 = vsyncpa [#allocation3], 0  ;;  %s585_s0 = inlined_call_operand.hbm [shape: f32[16,32], index: 0, kind: input, shape index: {}]   ;;  %s586_s1 = inlined_call_operand.vmem [shape: f32[2,32], index: 1, kind: input, shape index: {}]   ;;  %s587_s2 = inlined_call_operand.vmem [shape: f32[2,1], index: 2, kind: input, shape index: {}]   ;;  %s588_s3 = inlined_call_operand.hbm [shape: f32[8,128], index: 3, kind: output, shape index: {}]  }
   0x1   :  { %9 = vsyncpa [#allocation4], 0  ;;  %s14_s14 = sshll.u32 %s585_s0, 4  ;;  %s529_s15 = smov [#allocation2]   ;;  %s15_s14 = int_to_ptr.hbm [resolvable:$true] %s14_s14 }
   0x2   :  { %s16_s16 = sshll.u32 %s529_s15, 4  ;;  %s530_s17 = smov 128   ;;  %s17_s16 = int_to_ptr.vmem [resolvable:$true] %s16_s16 }
   0x3   :  { %s531_s18 = smov 8  }
   0x4   :  { %22 = dma.hbm_to_vmem [thread:$0]  %s15_s14, 256, %s17_s16, [#allocation3], %s530_s17, %s530_s17, %s531_s18  }
   0x5   :  { %525 = dma.done.wait [#allocation3], 256  }
   0x6   :  { %526 = vsyncadd [#allocation3], 4294967040  ;;  %v532_v0 = vmov 0   ;;  %vm34_vm0 = vcmask 261120   ;;  %v32_v1 = vld [vmem:[#allocation2 + $0x8] sm:$0xff]  ;;  %v31_v2 = vld [vmem:[#allocation2] sm:$0xff] }
   0x7   :  { %470 = vset.pattern.permute.xlu0 %v532_v0  ;;  %v33_v3 = vld [vmem:[%s586_s1] sm:$0x3]  ;;  %v206_v4 = vsel %vm34_vm0, 1.0, %v532_v0  ;;  %v42_v5 = vsel %vm34_vm0, %v32_v1, 0  ;;  %v39_v6 = vsel %vm34_vm0, %v31_v2, 0  ;;  %v204_v8 = vmul.f32 %v32_v1, %v32_v1  ;;  %s534_s1 = smov [#allocation5]  }
   0x8   :  { %v36_v7 = vsel %vm34_vm0, %v33_v3, 0  ;;  %v58_v9 = vand.u32 4294901760, %v42_v5  ;;  %v60_v10 = vand.u32 4294901760, %v39_v6  ;;  %v203_v12 = vmul.f32 %v31_v2, %v31_v2  ;;  %v373_v14 = vld [vmem:[%s587_s2] sm:$0x3]  ;;  %s449_s2 = sshll.u32 %s534_s1, 4  ;;  %s450_s2 = int_to_ptr.vmem [resolvable:$true] %s449_s2 }
   0x9   :  { %v565_v11 = vand.u32 4294901760, %v36_v7  ;;  %v212_v13 = vsel %vm34_vm0, %v204_v8, 0  ;;  %v233_v20 = vsub.f32 %v206_v4, %v206_v4  ;;  %376 = vperm.xlu0 %470, %v373_v14   ;;  %v533_v42 = vmov 1.0   ;;  %s451_s24 = sshll.u32 %s588_s3, 4  ;;  %s452_s24 = int_to_ptr.hbm [resolvable:$true] %s451_s24 }
   0xa   :  { %59 = vmatpush.xpose.msra.mxu0 %v58_v9  ;;  %v86_v15 = vsub.f32 %v42_v5, %v58_v9  ;;  %143 = vmatpush.xpose.msra.mxu3 %v58_v9  ;;  %v92_v16 = vsub.f32 %v39_v6, %v60_v10  ;;  %v228_v18 = vand.u32 4294901760, %v212_v13  ;;  %v209_v19 = vsel %vm34_vm0, %v203_v12, 0 }
   0xb   :  { %v63_v17 = vsub.f32 %v36_v7, %v565_v11  ;;  %v230_v25 = vand.u32 4294901760, %v209_v19  ;;  %v234_v31 = vand.u32 4294901760, %v233_v20  ;;  %vm406_vm4 = vcmask 123904  }
   0xc   :  { %118 = vmatpush.xpose.msra.mxu2 %v86_v15  ;;  %v87_v21 = vand.u32 4294901760, %v86_v15  ;;  %v93_v23 = vand.u32 4294901760, %v92_v16  ;;  %v256_v24 = vsub.f32 %v212_v13, %v228_v18  ;;  %v394_v14 = vlaneseq }
   0xd   :  { %v64_v22 = vand.u32 4294901760, %v63_v17  ;;  %v262_v30 = vsub.f32 %v209_v19, %v230_v25  ;;  %v235_v39 = vsub.f32 %v233_v20, %v234_v31  ;;  %vm438_vm9 = vcmask 130048  }
   0xe   :  { %61 = vmatpush.xpose.msra.mxu0 %v60_v10  ;;  %v88_v26 = vsub.f32 %v86_v15, %v87_v21  ;;  %145 = vmatpush.xpose.msra.mxu3 %v60_v10  ;;  %v94_v28 = vsub.f32 %v92_v16, %v93_v23  ;;  %v257_v29 = vand.u32 4294901760, %v256_v24 }
   0xf   :  { %v65_v27 = vsub.f32 %v63_v17, %v64_v22  ;;  %v263_v35 = vand.u32 4294901760, %v262_v30  ;;  %v236_v41 = vand.u32 4294901760, %v235_v39 }
  0x10   :  { %v89_v32 = vand.u32 4294901760, %v88_v26  ;;  %121 = vmatpush.xpose.msra.mxu2 %v92_v16  ;;  %v258_v34 = vsub.f32 %v256_v24, %v257_v29  ;;  %v95_v36 = vand.u32 4294901760, %v94_v28 }
  0x11   :  { %v66_v33 = vand.u32 4294901760, %v65_v27  ;;  %149 = vmatmul.f32.vlgmr.msra.gmra.mxu3 %v64_v22  ;;  %v264_v38 = vsub.f32 %v262_v30, %v263_v35 }
  0x12   :  { %170 = vmatpush.xpose.msrb.mxu0 %v87_v21  ;;  %90 = vmatpush.xpose.msra.mxu1 %v89_v32  ;;  %v259_v37 = vand.u32 4294901760, %v258_v34 }
  0x13   :  { %67 = vmatmul.f32.vlgmr.msra.gmra.mxu0 %v66_v33  ;;  %124 = vmatmul.f32.vlgmr.msra.gmra.mxu2 %v63_v17  ;;  %v265_v40 = vand.u32 4294901760, %v264_v38  ;;  %v400_v17 = vshrl.u32 %v394_v14, 7 }
  0x14   :  { %229 = vmatpush.xpose.msrb.mxu2 %v228_v18  ;;  %260 = vmatpush.xpose.msrb.mxu3 %v259_v37 }
  0x16   :  { %174 = vmatpush.xpose.msrb.mxu0 %v93_v23  ;;  %96 = vmatpush.xpose.msra.mxu1 %v95_v36  ;;  %v395_v23 = vand.u32 127, %v394_v14 }
  0x18   :  { %231 = vmatpush.xpose.msrb.mxu2 %v230_v25  ;;  %266 = vmatpush.xpose.msrb.mxu3 %v265_v40  ;;  %vm435_vm8 = vcmp.lt.s32.totalorder %v395_v23, 16 }
  0x19   :  { %98 = vmatmul.f32.vlgmr.msra.gmra.mxu1 %v565_v11 }
  0x1a   :  { %288 = vmatpush.xpose.msra.mxu0 %v256_v24  ;;  %195 = vmatpush.xpose.msrb.mxu1 %v58_v9 }
  0x1b   :  { %176 = vmatmul.f32.vlgmr.msrb.gmra.mxu0 %v565_v11  ;;  %237 = vmatmul.f32.vlgmr.msrb.gmra.mxu2 %v236_v41 }
  0x1c   :  { %340 = vmatpush.xpose.msra.mxu2 %v257_v29  ;;  %365 = vmatpush.xpose.msra.mxu3 %v228_v18 }
  0x1d   :  { %461 = vmatmul.msk.f32.vlgmr.msrb.gmra.mxu3 %vm34_vm0, %v533_v42 }
  0x1e   :  { %291 = vmatpush.xpose.msra.mxu0 %v262_v30  ;;  %197 = vmatpush.xpose.msrb.mxu1 %v60_v10 }
  0x20   :  { %344 = vmatpush.xpose.msra.mxu2 %v263_v35  ;;  %367 = vmatpush.xpose.msra.mxu3 %v230_v25 }
  0x21   :  { %199 = vmatmul.f32.vlgmr.msrb.gmra.mxu1 %v565_v11 }
  0x22   :  { %313 = vmatpush.xpose.msra.mxu1 %v228_v18 }
  0x23   :  { %294 = vmatmul.f32.vlgmr.msra.gmra.mxu0 %v233_v20  ;;  %462 = vmatmul.msk.f32.vlgmr.msra.gmra.mxu2 %vm34_vm0, %v533_v42  ;;  %v401_v20 = vmul.u32 8, %v400_v17 }
  0x25   :  { %463 = vmatmul.msk.f32.vlgmr.msra.gmra.mxu3 %vm34_vm0, %v533_v42  ;;  %v403_v24 = vadd.s32 8, %v401_v20  ;;  %vm402_vm5 = vcmp.ge.s32.totalorder %v395_v23, %v401_v20 }
  0x26   :  { %315 = vmatpush.xpose.msra.mxu1 %v230_v25 }
  0x27   :  { %vm404_vm6 = vcmp.lt.s32.totalorder %v395_v23, %v403_v24 }
  0x28   :  { %vm405_vm7 = vmand %vm402_vm5, %vm404_vm6 }
  0x29   :  { %319 = vmatmul.f32.vlgmr.msra.gmra.mxu1 %v234_v31 }
  0x7b   :  { %v377_v60 = vpop.permute.xlu0 %376 }
  0x90   :  { %v68_v43 = vpop.f32.mrf.mxu0 }
  0x94   :  { %v150_v44 = vpop.f32.mrf.mxu3 }
  0x96   :  { %v99_v45 = vpop.f32.mrf.mxu1  ;;  %v125_v46 = vpop.f32.mrf.mxu2 }
  0x97   :  { %v100_v63 = vadd.f32 %v99_v45, %v68_v43 }
  0x98   :  { %v177_v47 = vpop.f32.mrf.mxu0 }
  0x99   :  { %v126_v2 = vadd.f32 %v125_v46, %v100_v63 }
  0x9b   :  { %v151_v5 = vadd.f32 %v150_v44, %v126_v2 }
  0x9d   :  { %v178_v8 = vadd.f32 %v177_v47, %v151_v5 }
  0x9e   :  { %v200_v48 = vpop.f32.mrf.mxu1  ;;  %v238_v49 = vpop.f32.mrf.mxu2 }
  0x9f   :  { %v201_v11 = vadd.f32 %v200_v48, %v178_v8 }
  0xa0   :  { %v269_v50 = vpop.f32.mrf.mxu3  ;;  %v295_v52 = vpop.f32.mrf.mxu0 }
  0xa1   :  { %v270_v51 = vadd.f32 %v269_v50, %v238_v49 }
  0xa3   :  { %v296_v53 = vadd.f32 %v295_v52, %v270_v51 }
  0xa6   :  { %v320_v54 = vpop.f32.mrf.mxu1  ;;  %v347_v55 = vpop.f32.mrf.mxu2 }
  0xa7   :  { %v321_v56 = vadd.f32 %v320_v54, %v296_v53 }
  0xa8   :  { %v370_v57 = vpop.f32.mrf.mxu3 }
  0xa9   :  { %v348_v58 = vadd.f32 %v347_v55, %v321_v56 }
  0xab   :  { %v371_v59 = vadd.f32 %v370_v57, %v348_v58 }
  0xad   :  { %v379_v61 = vperm.slane %v371_v59, 0 }
  0xaf   :  { %v380_v62 = vmul.f32 %v379_v61, %v377_v60 }
  0xb1   :  { %471 = vrsqrt.f32 %v380_v62  ;;  %vm387_vm2 = vweird.f32 %v380_v62 }
  0xb7   :  { %v472_v0 = vpop.eup %471 }
  0xb8   :  { %v382_v1 = vmul.f32 %v472_v0, %v380_v62  ;;  %vm388_vm1 = vweird.f32 %v472_v0 }
  0xb9   :  { %vm389_vm3 = vmor %vm387_vm2, %vm388_vm1 }
  0xba   :  { %v383_v3 = vmul.f32 %v472_v0, %v382_v1 }
  0xbc   :  { %v384_v4 = vmul.f32 0.5, %v383_v3 }
  0xbe   :  { %v385_v6 = vsub.f32 1.5, %v384_v4 }
  0xc0   :  { %v386_v7 = vmul.f32 %v472_v0, %v385_v6 }
  0xc2   :  { %v390_v9 = vsel %vm389_vm3, %v472_v0, %v386_v7 }
  0xc3   :  { %v391_v10 = vmin.f32 %v390_v9, 1e+08 }
  0xc5   :  { %v392_v12 = vmul.f32 2.0, %v391_v10 }
  0xc7   :  { %v393_v13 = vmul.f32 %v392_v12, %v201_v11 }
  0xc9   :  { %v407_v15 = vsel %vm406_vm4, %v393_v13, -inf  ;;  %v427_v28 = vsel %vm405_vm7, %v393_v13, 0.0 }
  0xca   :  { %v408_v16 = vrot.slane %v407_v15, 4  ;;  %v428_v30 = vsel %vm406_vm4, %v427_v28, 0.0 }
  0xcb   :  { %v429_v33 = vrot.slane %v428_v30, 4 }
  0xcc   :  { %v409_v18 = vmax.f32 %v407_v15, %v408_v16 }
  0xcd   :  { %v430_v36 = vadd.f32 %v429_v33, %v428_v30 }
  0xce   :  { %v410_v19 = vrot.slane %v409_v18, 2 }
  0xcf   :  { %v431_v39 = vrot.slane %v430_v36, 2 }
  0xd0   :  { %v411_v21 = vmax.f32 %v409_v18, %v410_v19 }
  0xd1   :  { %v432_v41 = vadd.f32 %v431_v39, %v430_v36 }
  0xd2   :  { %v412_v22 = vrot.slane %v411_v21, 1 }
  0xd3   :  { %v433_v42 = vrot.slane %v432_v41, 1 }
  0xd4   :  { %v413_v25 = vmax.f32 %v411_v21, %v412_v22 }
  0xd5   :  { %v434_v46 = vadd.f32 %v433_v42, %v432_v41 }
  0xd6   :  { %v414_v26 = vsub.f32 %v393_v13, %v413_v25 }
  0xd8   :  { %v415_v27 = vmul.f32 1.442695, %v414_v26 }
  0xda   :  { %473 = vpow2.f32 %v415_v27 }
  0xe0   :  { %v474_v29 = vpop.eup %473 }
  0xe1   :  { %v417_v31 = vsel %vm406_vm4, %v474_v29, 0.0 }
  0xe2   :  { %v418_v32 = vrot.slane %v417_v31, 4 }
  0xe4   :  { %v419_v34 = vadd.f32 %v418_v32, %v417_v31 }
  0xe6   :  { %v420_v35 = vrot.slane %v419_v34, 2 }
  0xe8   :  { %v421_v37 = vadd.f32 %v420_v35, %v419_v34 }
  0xea   :  { %v422_v38 = vrot.slane %v421_v37, 1 }
  0xec   :  { %v423_v40 = vadd.f32 %v422_v38, %v421_v37 }
  0xee   :  { %475 = vlog2.f32 %v423_v40 }
  0xf4   :  { %v476_v43 = vpop.eup %475 }
  0xf5   :  { %v425_v44 = vmul.f32 0.6931472, %v476_v43 }
  0xf7   :  { %v426_v45 = vadd.f32 %v425_v44, %v413_v25 }
  0xf9   :  { %v436_v47 = vsub.f32 %v426_v45, %v434_v46 }
  0xfb   :  { %v437_v48 = vsel %vm435_vm8, %v436_v47, 0.0 }
  0xfc   :  { %v439_v49 = vsel %vm438_vm9, %v437_v48, 0.0 }
  0xfd   :  { %440 = vadd.xlane.f32.xlu0 %v439_v49 }
 0x170   :  { %v441_v50 = vpop.xlane.xlu0 %440 }
 0x171   :  { %v442_v51 = vmul.f32 0.0625, %v441_v50 }
 0x173   :  { %443 = vst [vmem:[#allocation5] sm:$0xff] %v442_v51 }
 0x174   :  { %454 = dma.vmem_to_hbm [thread:$0]  %s450_s2, 128, %s452_s24, [#allocation4]  }
 0x175   :  { %527 = dma.done.wait [#allocation4], 128  }
 0x176   :  { %528 = vsyncadd [#allocation4], 4294967168 }
 0x177   :  { %459 = vsyncpa [#allocation3], 1 }
 0x178   :  { %460 = vsyncpa [#allocation4], 1 }

</bundles_post_ra>
